<compile_context>
chip_gen: v6e
topology: v6e:2x2x1
jax: 0.10.0
libtpu: 0.0.40
codegen_flags: <defaults>
</compile_context>

<pallas_src>
import jax
import jax.numpy as jnp
from jax.experimental import pallas as pl
from jax.experimental.pallas import tpu as pltpu


def _round_up(x, m):
    return (x + m - 1) // m * m


def _inverse_head_kernel(curr_ref, next_ref, w1a_ref, w1b_ref, b1_ref,
                         w2_ref, b2_ref, o_ref):
    # curr/next: (TB, F)   w1a/w1b: (F, L)   b1: (1, L)
    # w2: (L, A)           b2: (1, A)        o: (TB, A)
    # h = ReLU(concat(curr, next) @ W1 + b1) as a split matmul -> no concat.
    h = jnp.dot(curr_ref[...], w1a_ref[...], preferred_element_type=jnp.float32)
    h = h + jnp.dot(next_ref[...], w1b_ref[...],
                    preferred_element_type=jnp.float32)
    h = jnp.maximum(h + b1_ref[...].astype(jnp.float32), 0.0)  # NoNorm -> ReLU
    if w2_ref.dtype != jnp.float32:
        h = h.astype(w2_ref.dtype)          # only cast when it is not a no-op
    y = jnp.dot(h, w2_ref[...], preferred_element_type=jnp.float32)
    y = y + b2_ref[...].astype(jnp.float32)
    o_ref[...] = y.astype(o_ref.dtype)


def _vmem_bytes(tb, F, L, A, itemsize):
    """Estimated VMEM footprint for one pipelined grid step."""
    in_bufs = 2 * 2 * tb * F * itemsize            # curr + next, double-buffered
    out_bufs = 2 * tb * A * itemsize               # output, double-buffered
    weights = (2 * F * L + L + L * A + A) * itemsize   # single-buffered residents
    interm = tb * L * 4 + tb * L * itemsize + tb * A * 4  # h f32, cast copy, y f32
    return in_bufs + out_bufs + weights + interm


def _choose_tb(B, F, L, A, itemsize, block_b, vmem_budget):
    """Balanced batch tile: >=2 grid steps (megacore / pipelining), fits VMEM."""
    if B <= 8:
        return B                                   # single full-dim tile
    steps = max(2, pl.cdiv(B, block_b))
    tb = min(_round_up(pl.cdiv(B, steps), 8), _round_up(B, 8))
    while tb > 8 and _vmem_bytes(tb, F, L, A, itemsize) > vmem_budget:
        tb = max(8, _round_up(tb // 2, 8))
    return tb


def _resident_spec(shape):
    """BlockSpec for a VMEM-resident (constant index_map) operand.

    Single-buffered (pl.Buffered(1)) to halve its VMEM footprint; falls back to
    the default pipelining on JAX versions without the pipeline_mode kwarg.
    """
    index_map = lambda i: (0,) * len(shape)
    try:
        return pl.BlockSpec(shape, index_map, pipeline_mode=pl.Buffered(1))
    except TypeError:
        return pl.BlockSpec(shape, index_map)


def inverse_model_output_heads(curr_emb, next_emb, params, *, block_b=1024):
    """JAX wrapper reproducing InverseModelOutputHeads.forward."""
    w1a, w1b, b1, w2, b2 = params
    B, F = curr_emb.shape
    L = w1a.shape[1]
    A = w2.shape[1]
    out_dtype = curr_emb.dtype
    itemsize = max(jnp.dtype(out_dtype).itemsize, jnp.dtype(w2.dtype).itemsize)

    # Biases as (1, N) rows (kept in their own dtype; added in f32 in-kernel).
    b1r = b1.reshape(1, L)
    b2r = b2.reshape(1, A)

    vmem_budget = 40 * 1024 * 1024            # conservative for v7x's 64 MiB VMEM
    tb = _choose_tb(B, F, L, A, itemsize, block_b, vmem_budget)
    grid = (pl.cdiv(B, tb),)                  # Pallas clips the partial edge block

    vmem_limit = int(min(max(_vmem_bytes(tb, F, L, A, itemsize) * 1.25
                             + (2 << 20), 32 * 1024 * 1024),
                         56 * 1024 * 1024))

    cost = pl.CostEstimate(
        flops=2 * B * (2 * F) * L + 2 * B * L * A,
        transcendentals=0,
        bytes_accessed=(2 * B * F                 # embeddings read
                        + 2 * F * L + L           # W1 + b1
                        + L * A + A               # W2 + b2 (unpadded)
                        + B * A                   # output write (unpadded)
                        ) * itemsize,
    )

    return pl.pallas_call(
        _inverse_head_kernel,
        out_shape=jax.ShapeDtypeStruct((B, A), out_dtype),
        grid=grid,
        in_specs=[
            pl.BlockSpec((tb, F), lambda i: (i, 0)),   # curr tile (pipelined)
            pl.BlockSpec((tb, F), lambda i: (i, 0)),   # next tile (pipelined)
            _resident_spec((F, L)),                    # W1a (VMEM-resident)
            _resident_spec((F, L)),                    # W1b
            _resident_spec((1, L)),                    # b1
            _resident_spec((L, A)),                    # W2 (unpadded)
            _resident_spec((1, A)),                    # b2
        ],
        out_specs=pl.BlockSpec((tb, A), lambda i: (i, 0)),
        compiler_params=pltpu.CompilerParams(
            dimension_semantics=("parallel",),         # megacore batch split
            vmem_limit_bytes=vmem_limit,
        ),
        cost_estimate=cost,
    )(curr_emb, next_emb, w1a, w1b, b1r, w2, b2r)


def init_params(key, features_dim, latents_dim, action_num):
    """Deterministic synthetic parameters (shapes match the nn.Linear layers)."""
    din = features_dim * 2
    k1, k2, k3, k4 = jax.random.split(key, 4)
    lim1 = 1.0 / jnp.sqrt(din)
    lim2 = 1.0 / jnp.sqrt(latents_dim)
    w1 = jax.random.uniform(k1, (din, latents_dim), jnp.float32, -lim1, lim1)
    b1 = jax.random.uniform(k2, (latents_dim,), jnp.float32, -lim1, lim1)
    w2 = jax.random.uniform(k3, (latents_dim, action_num), jnp.float32,
                            -lim2, lim2)
    b2 = jax.random.uniform(k4, (action_num,), jnp.float32, -lim2, lim2)
    # W1 pre-split into the curr-embedding and next-embedding row blocks.
    w1a, w1b = w1[:features_dim], w1[features_dim:]
    return (w1a, w1b, b1, w2, b2)


def reference(curr_emb, next_emb, params):
    """Pure-JAX reference for correctness check."""
    w1a, w1b, b1, w2, b2 = params
    w1 = jnp.concatenate([w1a, w1b], axis=0)
    x = jnp.concatenate([curr_emb, next_emb], axis=1)
    h = jnp.maximum(x @ w1 + b1, 0.0)
    return h @ w2 + b2


if __name__ == "__main__":
    # Small shapes consistent with the module.
    B = 8
    features_dim = 16
    latents_dim = 32
    action_num = 4

    key = jax.random.PRNGKey(0)
    k_emb1, k_emb2, k_par = jax.random.split(key, 3)

    curr_emb = jax.random.normal(k_emb1, (B, features_dim), jnp.float32)
    next_emb = jax.random.normal(k_emb2, (B, features_dim), jnp.float32)

    params = init_params(k_par, features_dim, latents_dim, action_num)

    out = inverse_model_output_heads(curr_emb, next_emb, params)
    out = jax.block_until_ready(out)

    ref = reference(curr_emb, next_emb, params)
    assert out.shape == (B, action_num), out.shape
    assert jnp.allclose(out, ref, atol=1e-5, rtol=1e-5), (out, ref)

    print("KERNEL_OK")
</pallas_src>

<mosaic_0001>
module attributes {stable_mosaic.version = 11 : i64} {
  func.func @_inverse_head_kernel(%arg0: i32, %arg1: memref<8x16xf32, #tpu.memory_space<vmem>>, %arg2: memref<8x16xf32, #tpu.memory_space<vmem>>, %arg3: memref<16x32xf32, #tpu.memory_space<vmem>>, %arg4: memref<16x32xf32, #tpu.memory_space<vmem>>, %arg5: memref<1x32xf32, #tpu.memory_space<vmem>>, %arg6: memref<32x4xf32, #tpu.memory_space<vmem>>, %arg7: memref<1x4xf32, #tpu.memory_space<vmem>>, %arg8: memref<8x4xf32, #tpu.memory_space<vmem>>) attributes {dimension_semantics = [#tpu.dimension_semantics<parallel>], iteration_bounds = array<i64: 1>, scalar_prefetch = 0 : i64, scratch_operands = 0 : i64, tpu.core_type = #tpu.core_type<tc>, window_params = [{transform_indices = @transform_0, window_bounds = array<i64: 8, 16>}, {transform_indices = @transform_1, window_bounds = array<i64: 8, 16>}, {pipeline_mode = #tpu.pipeline_mode<synchronous>, transform_indices = @transform_2, window_bounds = array<i64: 16, 32>}, {pipeline_mode = #tpu.pipeline_mode<synchronous>, transform_indices = @transform_3, window_bounds = array<i64: 16, 32>}, {pipeline_mode = #tpu.pipeline_mode<synchronous>, transform_indices = @transform_4, window_bounds = array<i64: 1, 32>}, {pipeline_mode = #tpu.pipeline_mode<synchronous>, transform_indices = @transform_5, window_bounds = array<i64: 32, 4>}, {pipeline_mode = #tpu.pipeline_mode<synchronous>, transform_indices = @transform_6, window_bounds = array<i64: 1, 4>}, {transform_indices = @transform_7, window_bounds = array<i64: 8, 4>}]} {
    %c0 = arith.constant 0 : index
    %c0_0 = arith.constant 0 : index
    %0 = vector.load %arg1[%c0, %c0_0] : memref<8x16xf32, #tpu.memory_space<vmem>>, vector<8x16xf32>
    %c0_1 = arith.constant 0 : index
    %c0_2 = arith.constant 0 : index
    %1 = vector.load %arg3[%c0_1, %c0_2] : memref<16x32xf32, #tpu.memory_space<vmem>>, vector<16x32xf32>
    %cst = arith.constant dense<0.000000e+00> : vector<8x32xf32>
    %2 = tpu.matmul %0, %1, %cst {dimension_numbers = #tpu.dot_dimension_numbers<[1], [0], [0], [1], [0, 0, 1, 1], [], []>} : vector<8x16xf32>, vector<16x32xf32>, vector<8x32xf32> -> vector<8x32xf32>
    %c0_3 = arith.constant 0 : index
    %c0_4 = arith.constant 0 : index
    %3 = vector.load %arg2[%c0_3, %c0_4] : memref<8x16xf32, #tpu.memory_space<vmem>>, vector<8x16xf32>
    %c0_5 = arith.constant 0 : index
    %c0_6 = arith.constant 0 : index
    %4 = vector.load %arg4[%c0_5, %c0_6] : memref<16x32xf32, #tpu.memory_space<vmem>>, vector<16x32xf32>
    %cst_7 = arith.constant dense<0.000000e+00> : vector<8x32xf32>
    %5 = tpu.matmul %3, %4, %cst_7 {dimension_numbers = #tpu.dot_dimension_numbers<[1], [0], [0], [1], [0, 0, 1, 1], [], []>} : vector<8x16xf32>, vector<16x32xf32>, vector<8x32xf32> -> vector<8x32xf32>
    %6 = arith.addf %2, %5 : vector<8x32xf32>
    %c0_8 = arith.constant 0 : index
    %c0_9 = arith.constant 0 : index
    %7 = vector.load %arg5[%c0_8, %c0_9] : memref<1x32xf32, #tpu.memory_space<vmem>>, vector<1x32xf32>
    %8 = vector.broadcast %7 : vector<1x32xf32> to vector<8x32xf32>
    %9 = arith.addf %6, %8 : vector<8x32xf32>
    %cst_10 = arith.constant 0.000000e+00 : f32
    %10 = vector.broadcast %cst_10 : f32 to vector<8x32xf32>
    %11 = arith.maximumf %9, %10 : vector<8x32xf32>
    %c0_11 = arith.constant 0 : index
    %c0_12 = arith.constant 0 : index
    %12 = vector.load %arg6[%c0_11, %c0_12] : memref<32x4xf32, #tpu.memory_space<vmem>>, vector<32x4xf32>
    %cst_13 = arith.constant dense<0.000000e+00> : vector<8x4xf32>
    %13 = tpu.matmul %11, %12, %cst_13 {dimension_numbers = #tpu.dot_dimension_numbers<[1], [0], [0], [1], [0, 0, 1, 1], [], []>} : vector<8x32xf32>, vector<32x4xf32>, vector<8x4xf32> -> vector<8x4xf32>
    %c0_14 = arith.constant 0 : index
    %c0_15 = arith.constant 0 : index
    %14 = vector.load %arg7[%c0_14, %c0_15] : memref<1x4xf32, #tpu.memory_space<vmem>>, vector<1x4xf32>
    %15 = vector.broadcast %14 : vector<1x4xf32> to vector<8x4xf32>
    %16 = arith.addf %13, %15 : vector<8x4xf32>
    %c0_16 = arith.constant 0 : index
    %c0_17 = arith.constant 0 : index
    %17 = vector.load %arg8[%c0_16, %c0_17] : memref<8x4xf32, #tpu.memory_space<vmem>>, vector<8x4xf32>
    tpu.vector_store %arg8[%c0_16, %c0_17], %16 {strides = array<i32>} : memref<8x4xf32, #tpu.memory_space<vmem>>, vector<8x4xf32>,
    return
  }
  func.func @transform_0(%arg0: i32) -> (i32, i32) {
    %c0_i32 = arith.constant 0 : i32
    %c0_i32_0 = arith.constant 0 : i32
    return %arg0, %c0_i32 : i32, i32
  }
  func.func @transform_1(%arg0: i32) -> (i32, i32) {
    %c0_i32 = arith.constant 0 : i32
    %c0_i32_0 = arith.constant 0 : i32
    return %arg0, %c0_i32 : i32, i32
  }
  func.func @transform_2(%arg0: i32) -> (i32, i32) {
    %c0_i32 = arith.constant 0 : i32
    %c0_i32_0 = arith.constant 0 : i32
    %c0_i32_1 = arith.constant 0 : i32
    return %c0_i32, %c0_i32_0 : i32, i32
  }
  func.func @transform_3(%arg0: i32) -> (i32, i32) {
    %c0_i32 = arith.constant 0 : i32
    %c0_i32_0 = arith.constant 0 : i32
    %c0_i32_1 = arith.constant 0 : i32
    return %c0_i32, %c0_i32_0 : i32, i32
  }
  func.func @transform_4(%arg0: i32) -> (i32, i32) {
    %c0_i32 = arith.constant 0 : i32
    %c0_i32_0 = arith.constant 0 : i32
    %c0_i32_1 = arith.constant 0 : i32
    return %c0_i32, %c0_i32_0 : i32, i32
  }
  func.func @transform_5(%arg0: i32) -> (i32, i32) {
    %c0_i32 = arith.constant 0 : i32
    %c0_i32_0 = arith.constant 0 : i32
    %c0_i32_1 = arith.constant 0 : i32
    return %c0_i32, %c0_i32_0 : i32, i32
  }
  func.func @transform_6(%arg0: i32) -> (i32, i32) {
    %c0_i32 = arith.constant 0 : i32
    %c0_i32_0 = arith.constant 0 : i32
    %c0_i32_1 = arith.constant 0 : i32
    return %c0_i32, %c0_i32_0 : i32, i32
  }
  func.func @transform_7(%arg0: i32) -> (i32, i32) {
    %c0_i32 = arith.constant 0 : i32
    %c0_i32_0 = arith.constant 0 : i32
    return %arg0, %c0_i32 : i32, i32
  }
}

</mosaic_0001>

<bundles_post_ra>
// kernel: tpu_custom_call.1
= control target key start
LH: loop header
LB: loop body
LE: loop exit
PB: predicated region body
PF: predicated region fallthrough
CT: control target
= control target key end

     0   :  { %12 = vsyncpa [#allocation3], 0  ;;  %s480_s0 = inlined_call_operand.hbm [shape: f32[8,16], index: 0, kind: input, shape index: {}]   ;;  %s481_s1 = inlined_call_operand.hbm [shape: f32[8,16], index: 1, kind: input, shape index: {}]   ;;  %s482_s2 = inlined_call_operand.vmem [shape: f32[16,32], index: 2, kind: input, shape index: {}]   ;;  %s483_s3 = inlined_call_operand.vmem [shape: f32[16,32], index: 3, kind: input, shape index: {}]   ;;  %s484_s4 = inlined_call_operand.vmem [shape: f32[1,32], index: 4, kind: input, shape index: {}]   ;;  %s485_s5 = inlined_call_operand.vmem [shape: f32[32,4], index: 5, kind: input, shape index: {}]   ;;  %s486_s6 = inlined_call_operand.vmem [shape: f32[1,4], index: 6, kind: input, shape index: {}]   ;;  %s487_s7 = inlined_call_operand.vmem [shape: f32[8,4], index: 7, kind: output, shape index: {}]  }
   0x1   :  { %13 = vsyncpa [#allocation5], 0  ;;  %s394_s24 = smov [#allocation2]   ;;  %s395_s26 = smov [#allocation4]  }
   0x2   :  { %s20_s25 = sshll.u32 %s394_s24, 4  ;;  %s30_s27 = sshll.u32 %s395_s26, 4  ;;  %s21_s25 = int_to_ptr.vmem [resolvable:$true] %s20_s25  ;;  %s31_s27 = int_to_ptr.vmem [resolvable:$true] %s30_s27 }
   0x3   :  { %s358_s28 = scalar_lea.vmem %s21_s25, 128  ;;  %p363_p1 = scmp.lt.s32.totalorder %s21_s25, %s21_s25 }
   0x4   :  { %p359_p0 = scmp.ne.s32.totalorder %s21_s25, %s358_s28  ;;  %p364_p2 = scmp.lt.s32.totalorder %s358_s28, %s358_s28 }
   0x6   :  { %p365_p3 = por %p364_p2, %p363_p1 }
   0x8   :  { %p366_p4 = pnand %p365_p3, %p359_p0 }
   0xa   :  { %369 = shalt.err (!%p366_p4)
}
   0xb   :  { %23 = dma.hbm_to_vmem [thread:$0]  %s480_s0, 128, %s21_s25, [#allocation3]  }
   0xc   :  { %s378_s8 = scalar_lea.vmem %s31_s27, 128  ;;  %p383_p6 = scmp.lt.s32.totalorder %s31_s27, %s31_s27 }
   0xd   :  { %p379_p5 = scmp.ne.s32.totalorder %s31_s27, %s378_s8  ;;  %p384_p7 = scmp.lt.s32.totalorder %s378_s8, %s378_s8 }
   0xf   :  { %p385_p8 = por %p384_p7, %p383_p6 }
  0x11   :  { %p386_p9 = pnand %p385_p8, %p379_p5 }
  0x13   :  { %389 = shalt.err (!%p386_p9)
}
  0x14   :  { %33 = dma.hbm_to_vmem [thread:$0]  %s481_s1, 128, %s31_s27, [#allocation5]  }
  0x15   :  { %390 = dma.done.wait [#allocation3], 128  }
  0x16   :  { %391 = vsyncadd [#allocation3], 4294967168 }
  0x17   :  { %392 = dma.done.wait [#allocation5], 128  }
  0x18   :  { %393 = vsyncadd [#allocation5], 4294967168  ;;  %v396_v0 = vmov 0.0   ;;  %vm397_vm0 = vmmov 0   ;;  %v55_v1 = vld [vmem:[%s483_s3 + $0x8] sm:$0xff]  ;;  %v54_v2 = vld [vmem:[%s483_s3] sm:$0xff] }
  0x19   :  { %321 = vmatprep.subr.mxu1 %v396_v0  ;;  %325 = vmatprep.mubr.msk.f32.mxu1 %vm397_vm0, %v396_v0  ;;  %v53_v3 = vld [vmem:[#allocation4] sm:$0xff]  ;;  %vm56_vm1 = vcmask 130048   ;;  %v51_v5 = vld [vmem:[%s482_s2] sm:$0xff]  ;;  %v215_v7 = vld [vmem:[%s485_s5 + $0x18] sm:$0xff]  ;;  %vm223_vm2 = vcmask 261120   ;;  %vm297_vm3 = vcmask 31744  }
  0x1a   :  { %335 = vmatprep.subr.mxu0 %v396_v0  ;;  %343 = vmatprep.mubr.msk.f32.mxu0 %vm397_vm0, %v396_v0  ;;  %v52_v4 = vld [vmem:[%s482_s2 + $0x8] sm:$0xff]  ;;  %v50_v6 = vld [vmem:[#allocation2] sm:$0xff]  ;;  %v214_v8 = vld [vmem:[%s485_s5 + $0x10] sm:$0xff] }
  0x1b   :  { %322 = vmatpush3.msra.mxu1 %v55_v1  ;;  %336 = vmatpush3.msra.mxu0 %v215_v7  ;;  %v213_v9 = vld [vmem:[%s485_s5 + $0x8] sm:$0xff]  ;;  %v212_v10 = vld [vmem:[%s485_s5] sm:$0xff] }
  0x1c   :  { %323 = vmatprep.subr.mxu1 %v396_v0  ;;  %337 = vmatprep.subr.mxu0 %v396_v0  ;;  %v307_v14 = vld [vmem:[%s484_s4] ss:$0 sm:$0xff] }
  0x1d   :  { %324 = vmatpush3.msra.mxu1 %v54_v2  ;;  %338 = vmatpush3.msra.mxu0 %v214_v8  ;;  %v308_v19 = vld [vmem:[%s486_s6] ss:$0 sm:$0xff] }
  0x1e   :  { %326 = vmatmul.mubr.msk.f32.vlgmr.msra.gmra.mxu1 %vm56_vm1, %v53_v3  ;;  %328 = vmatprep.subr.mxu1 %v396_v0 }
  0x1f   :  { %329 = vmatpush3.msra.mxu1 %v52_v4  ;;  %332 = vmatprep.mubr.msk.f32.mxu1 %vm397_vm0, %v396_v0 }
  0x20   :  { %330 = vmatprep.subr.mxu1 %v396_v0  ;;  %339 = vmatprep.subr.mxu0 %v396_v0 }
  0x21   :  { %331 = vmatpush3.msra.mxu1 %v51_v5  ;;  %340 = vmatpush3.msra.mxu0 %v213_v9 }
  0x22   :  { %333 = vmatmul.mubr.msk.f32.vlgmr.msra.gmra.mxu1 %vm56_vm1, %v50_v6  ;;  %341 = vmatprep.subr.mxu0 %v396_v0 }
  0x23   :  { %342 = vmatpush3.msra.mxu0 %v212_v10 }
  0xde   :  { %v126_v11 = vpop.f32.mrf.mxu1 }
  0xe0   :  { %v327_v12 = vpop.f32.mrf.mxu1 }
  0xe2   :  { %v199_v13 = vpop.f32.mrf.mxu1 }
  0xe3   :  { %v200_v15 = vadd.f32 %v199_v13, %v126_v11 }
  0xe4   :  { %v334_v16 = vpop.f32.mrf.mxu1 }
  0xe5   :  { %v210_v17 = vadd.f32 %v307_v14, %v200_v15 }
  0xe7   :  { %v211_v18 = vmax.f32 %v210_v17, 0.0 }
  0xe9   :  { %344 = vmatmul.mubr.msk.f32.vlgmr.msra.gmra.mxu0 %vm223_vm2, %v211_v18 }
 0x1a9   :  { %v293_v20 = vpop.f32.mrf.mxu0 }
 0x1aa   :  { %v294_v21 = vadd.f32 %v308_v19, %v293_v20 }
 0x1ab   :  { %v345_v22 = vpop.f32.mrf.mxu0 }
 0x1ac   :  { %298 = vst.msk [vmem:[%s487_s7] sm:$0xff] %vm297_vm3, %v294_v21 }
 0x1ad   :  { %303 = vsyncpa [#allocation3], 1 }
 0x1ae   :  { %304 = vsyncpa [#allocation5], 1 }

</bundles_post_ra>
